<compile_context>
chip_gen: v6e
topology: v6e:2x2x1
jax: 0.10.0
libtpu: 0.0.40
codegen_flags: <defaults>
</compile_context>

<pallas_src>
import math
from functools import partial

import jax
import jax.numpy as jnp
from jax.experimental import pallas as pl
from jax.experimental.pallas import tpu as pltpu

LANES = 128  # TPU vreg lane width; one attention "head group" is one 128-lane slab.


def _pick_tile(dim, desired, quantum=128):
    """Largest multiple of `quantum` <= min(desired, dim) that divides dim, else dim."""
    t = min(desired, dim)
    t = (t // quantum) * quantum
    while t >= quantum:
        if dim % t == 0:
            return t
        t -= quantum
    return dim


# ----------------------------------------------------------------------------
# Kernel 1: tiled QKV projection  out = x @ W + b  (bf16 MXU operands, f32 accum)
# ----------------------------------------------------------------------------
def _qkv_proj_kernel(x_ref, w_ref, b_ref, o_ref, acc_ref):
    k_idx = pl.program_id(2)

    @pl.when(k_idx == 0)
    def _():
        acc_ref[...] = jnp.zeros_like(acc_ref)

    # Cast the x tile in-kernel (no standalone HBM cast pass in the wrapper).
    acc_ref[...] += jnp.dot(x_ref[...].astype(w_ref.dtype), w_ref[...],
                            preferred_element_type=jnp.float32)

    @pl.when(k_idx == pl.num_programs(2) - 1)
    def _():
        # bias added exactly once, on the final K step
        o_ref[...] = (acc_ref[...] + b_ref[...]).astype(o_ref.dtype)


def qkv_projection(x_flat, w, b, *, tm=256, tn=256, tk=512,
                   out_dtype=jnp.bfloat16):
    """x_flat: (M, K) (any float dtype), w: (K, N) bf16, b: (N,) f32 -> (M, N)."""
    M, K = x_flat.shape
    K2, N = w.shape
    assert K == K2 and b.shape == (N,)
    tm = _pick_tile(M, tm)
    tn = _pick_tile(N, tn)
    tk = _pick_tile(K, tk)

    grid = (M // tm, N // tn, K // tk)
    return pl.pallas_call(
        _qkv_proj_kernel,
        out_shape=jax.ShapeDtypeStruct((M, N), out_dtype),
        grid_spec=pltpu.PrefetchScalarGridSpec(
            num_scalar_prefetch=0,
            grid=grid,
            in_specs=[
                pl.BlockSpec((tm, tk), lambda i, j, k: (i, k)),
                pl.BlockSpec((tk, tn), lambda i, j, k: (k, j)),
                pl.BlockSpec((1, tn), lambda i, j, k: (0, j)),
            ],
            out_specs=pl.BlockSpec((tm, tn), lambda i, j, k: (i, j)),
            scratch_shapes=[pltpu.VMEM((tm, tn), jnp.float32)],
        ),
        compiler_params=pltpu.CompilerParams(
            dimension_semantics=("parallel", "parallel", "arbitrary")),
    )(x_flat, w, b.reshape(1, N))


# ----------------------------------------------------------------------------
# Kernel 2: flash-style multi-head attention, head-group (128-lane) blocked.
# All VMEM scratch reads/writes are full 128-lane; per-head work stays in registers.
# ----------------------------------------------------------------------------
def _flash_mha_kernel(q_ref, v_ref, k_ref, o_ref, m_sc, l_sc, acc_sc,
                      *, heads_per_group, head_dim):
    kv_idx = pl.program_id(3)

    @pl.when(kv_idx == 0)
    def _():
        m_sc[...] = jnp.full_like(m_sc, -jnp.inf)
        l_sc[...] = jnp.zeros_like(l_sc)
        acc_sc[...] = jnp.zeros_like(acc_sc)

    q_g = q_ref[0]      # (tq,  128) bf16; softmax scale already folded into W_q / b_q
    k_g = k_ref[0]      # (tkv, 128) bf16
    v_g = v_ref[0]      # (tkv, 128) bf16
    m_prev = m_sc[...]  # (tq, 128) f32, lane-replicated per head

    m_parts, lsum_parts, o_parts = [], [], []
    for h in range(heads_per_group):
        lo, hi = h * head_dim, (h + 1) * head_dim
        # s = q_h @ k_h^T on the MXU (bf16 in, f32 accumulate)
        s = jax.lax.dot_general(
            q_g[:, lo:hi], k_g[:, lo:hi], (((1,), (1,)), ((), ())),
            preferred_element_type=jnp.float32)                     # (tq, tkv)
        m_prev_h = m_prev[:, lo:lo + 1]                             # register slice
        m_new_h = jnp.maximum(m_prev_h, jnp.max(s, axis=-1, keepdims=True))
        p = jnp.exp(s - m_new_h)                                    # (tq, tkv) f32
        o_parts.append(jnp.dot(p.astype(v_g.dtype), v_g[:, lo:hi],
                               preferred_element_type=jnp.float32))  # (tq, hd)
        lsum_parts.append(jnp.broadcast_to(
            jnp.sum(p, axis=-1, keepdims=True), (p.shape[0], head_dim)))
        m_parts.append(jnp.broadcast_to(m_new_h, (p.shape[0], head_dim)))

    # Assemble full 128-lane group values in registers, then single lane-dense stores.
    m_new = jnp.concatenate(m_parts, axis=-1)                       # (tq, 128)
    alpha = jnp.exp(m_prev - m_new)                                 # (tq, 128)
    l_sc[...] = alpha * l_sc[...] + jnp.concatenate(lsum_parts, axis=-1)
    acc_sc[...] = alpha * acc_sc[...] + jnp.concatenate(o_parts, axis=-1)
    m_sc[...] = m_new

    @pl.when(kv_idx == pl.num_programs(3) - 1)
    def _():
        # l is lane-replicated per head, so the normalization and the final store are
        # a single full-width operation (exact reciprocal: finalize only, negligible cost).
        o_ref[0] = (acc_sc[...] *
                    pl.reciprocal(l_sc[...], approx=False)).astype(o_ref.dtype)


def flash_mha_from_qvk(qvk, head_num, *, tq=256, tkv=256,
                       out_dtype=jnp.bfloat16):
    """qvk: (B, N, 3D) with q=[0:D], v=[D:2D], k=[2D:3D]  ->  (B, N, D)."""
    B, N, D3 = qvk.shape
    assert D3 % 3 == 0
    D = D3 // 3
    assert D % head_num == 0
    head_dim = D // head_num
    assert D % LANES == 0, "model dim must be a multiple of 128 (lane-dense blocks)"
    assert head_dim <= LANES and LANES % head_dim == 0, \
        "head_dim must divide 128"  # TODO(synk): heads spanning >128 lanes unsupported
    heads_per_group = LANES // head_dim
    n_groups = D // LANES

    tq = _pick_tile(N, tq)
    tkv = _pick_tile(N, tkv)

    grid = (B, n_groups, N // tq, N // tkv)
    kernel = partial(_flash_mha_kernel,
                     heads_per_group=heads_per_group, head_dim=head_dim)

    # Column-block selection replaces chunk + head transpose:
    # q -> blocks [0, n_groups), v -> [n_groups, 2n), k -> [2n, 3n).
    q_spec = pl.BlockSpec((1, tq, LANES), lambda b, g, qi, kv: (b, qi, g))
    v_spec = pl.BlockSpec((1, tkv, LANES), lambda b, g, qi, kv: (b, kv, n_groups + g))
    k_spec = pl.BlockSpec((1, tkv, LANES), lambda b, g, qi, kv: (b, kv, 2 * n_groups + g))
    o_spec = pl.BlockSpec((1, tq, LANES), lambda b, g, qi, kv: (b, qi, g))

    return pl.pallas_call(
        kernel,
        out_shape=jax.ShapeDtypeStruct((B, N, D), out_dtype),
        grid_spec=pltpu.PrefetchScalarGridSpec(
            num_scalar_prefetch=0,
            grid=grid,
            in_specs=[q_spec, v_spec, k_spec],
            out_specs=o_spec,
            scratch_shapes=[
                pltpu.VMEM((tq, LANES), jnp.float32),  # running max m (lane-replicated)
                pltpu.VMEM((tq, LANES), jnp.float32),  # running sum l (lane-replicated)
                pltpu.VMEM((tq, LANES), jnp.float32),  # acc, concat-head layout
            ],
        ),
        compiler_params=pltpu.CompilerParams(
            dimension_semantics=("parallel", "parallel", "parallel", "arbitrary")),
    )(qvk, qvk, qvk)


# ----------------------------------------------------------------------------
# Module wrapper
# ----------------------------------------------------------------------------
class MultiHeadSelfAttentionPallas:
    def __init__(self, dim, head_num, key):
        assert dim % head_num == 0
        self.dim = dim
        self.head_num = head_num
        self.head_dim = dim // head_num

        kw, kb = jax.random.split(key)
        bound = 1.0 / math.sqrt(dim)
        # PyTorch stores weight as (out, in); we keep (in, out) for x @ W.
        self.w = jax.random.uniform(kw, (dim, 3 * dim), jnp.float32,
                                    minval=-bound, maxval=bound)
        self.b = jax.random.uniform(kb, (3 * dim,), jnp.float32,
                                    minval=-bound, maxval=bound)

        # Fold the 1/sqrt(d') softmax scale into the q columns (done once at init).
        scale = 1.0 / math.sqrt(self.head_dim)
        col_scale = jnp.concatenate(
            [jnp.full((dim,), scale, jnp.float32),
             jnp.ones((2 * dim,), jnp.float32)])
        self.w_scaled = (self.w * col_scale[None, :]).astype(jnp.bfloat16)
        self.b_scaled = (self.b * col_scale).astype(jnp.float32)

    def __call__(self, x, out_dtype=jnp.bfloat16):
        B, N, D = x.shape
        assert D == self.dim

        # Tiled bf16/f32-acc QKV projection (x cast to bf16 tile-by-tile in-kernel);
        # qvk kept bf16 to halve HBM traffic into the attention kernel.
        qvk = qkv_projection(x.reshape(B * N, D), self.w_scaled, self.b_scaled)
        qvk = qvk.reshape(B, N, 3 * D)

        # Head-group-blocked flash attention reading q/v/k slabs of qvk directly;
        # output already in concat-head layout -> no split / transpose / merge passes.
        return flash_mha_from_qvk(qvk, self.head_num, out_dtype=out_dtype)


# ----------------------------------------------------------------------------
# Pure-JAX f32 reference (mirrors the PyTorch forward) for a sanity check.
# ----------------------------------------------------------------------------
def reference_forward(x, w, b, head_num):
    B, N, D = x.shape
    hd = D // head_num
    qvk = x.reshape(B * N, D) @ w + b
    qvk = qvk.reshape(B, N, 3 * D)
    q_c, v_c, k_c = jnp.split(qvk, 3, axis=2)   # forward unpacks q, v, k

    def to_heads(t):
        return t.reshape(B, N, head_num, hd).transpose(0, 2, 1, 3)

    q, v, k = to_heads(q_c), to_heads(v_c), to_heads(k_c)
    s = jnp.einsum("bhqd,bhkd->bhqk", q, k) / math.sqrt(hd)
    atn = jax.nn.softmax(s, axis=-1)
    out = jnp.einsum("bhqk,bhkd->bhqd", atn, v)
    return out.transpose(0, 2, 1, 3).reshape(B, N, D)


if __name__ == "__main__":
    # Lane-aligned small shapes: batch=2, seq=256, dim=128, heads=4 (d'=32).
    B, N, D, H = 2, 256, 128, 4

    key = jax.random.PRNGKey(0)
    k_param, k_x = jax.random.split(key)

    module = MultiHeadSelfAttentionPallas(dim=D, head_num=H, key=k_param)
    x = jax.random.normal(k_x, (B, N, D), dtype=jnp.float32)

    out = jax.block_until_ready(module(x))

    ref = reference_forward(x, module.w, module.b, H)
    assert out.shape == (B, N, D)
    # bf16 matmul operands + bf16 output -> relaxed tolerance vs f32 reference.
    err = jnp.max(jnp.abs(out.astype(jnp.float32) - ref))
    assert jnp.allclose(out.astype(jnp.float32), ref, atol=3e-2, rtol=3e-2), (
        f"mismatch vs reference: max abs err {err}")

    print("KERNEL_OK")
</pallas_src>

<mosaic_0001>
module attributes {stable_mosaic.version = 11 : i64} {
  func.func @_qkv_proj_kernel(%arg0: i32, %arg1: i32, %arg2: i32, %arg3: memref<256x128xf32, #tpu.memory_space<vmem>>, %arg4: memref<128x128xbf16, #tpu.memory_space<vmem>>, %arg5: memref<1x128xf32, #tpu.memory_space<vmem>>, %arg6: memref<256x128xbf16, #tpu.memory_space<vmem>>, %arg7: memref<256x128xf32, #tpu.memory_space<vmem>>) attributes {dimension_semantics = [#tpu.dimension_semantics<parallel>, #tpu.dimension_semantics<parallel>, #tpu.dimension_semantics<arbitrary>], iteration_bounds = array<i64: 2, 3, 1>, scalar_prefetch = 0 : i64, scratch_operands = 1 : i64, tpu.core_type = #tpu.core_type<tc>, window_params = [{transform_indices = @transform_0, window_bounds = array<i64: 256, 128>}, {transform_indices = @transform_1, window_bounds = array<i64: 128, 128>}, {transform_indices = @transform_2, window_bounds = array<i64: 1, 128>}, {transform_indices = @transform_3, window_bounds = array<i64: 256, 128>}]} {
    %c0_i32 = arith.constant 0 : i32
    %0 = arith.cmpi eq, %arg2, %c0_i32 : i32
    %1 = arith.extui %0 : i1 to i32
    %c0_i32_0 = arith.constant 0 : i32
    %2 = arith.cmpi ne, %1, %c0_i32_0 : i32
    scf.if %2 {
      %cst_10 = arith.constant 0.000000e+00 : f32
      %13 = vector.broadcast %cst_10 : f32 to vector<256x128xf32>
      %c0_11 = arith.constant 0 : index
      %c0_12 = arith.constant 0 : index
      %14 = vector.load %arg7[%c0_11, %c0_12] : memref<256x128xf32, #tpu.memory_space<vmem>>, vector<256x128xf32>
      tpu.vector_store %arg7[%c0_11, %c0_12], %13 {strides = array<i32>} : memref<256x128xf32, #tpu.memory_space<vmem>>, vector<256x128xf32>,
    } else {
    }
    %c0 = arith.constant 0 : index
    %c0_1 = arith.constant 0 : index
    %3 = vector.load %arg7[%c0, %c0_1] : memref<256x128xf32, #tpu.memory_space<vmem>>, vector<256x128xf32>
    %c0_2 = arith.constant 0 : index
    %c0_3 = arith.constant 0 : index
    %4 = vector.load %arg3[%c0_2, %c0_3] : memref<256x128xf32, #tpu.memory_space<vmem>>, vector<256x128xf32>
    %5 = arith.truncf %4 : vector<256x128xf32> to vector<256x128xbf16>
    %c0_4 = arith.constant 0 : index
    %c0_5 = arith.constant 0 : index
    %6 = vector.load %arg4[%c0_4, %c0_5] : memref<128x128xbf16, #tpu.memory_space<vmem>>, vector<128x128xbf16>
    %cst = arith.constant dense<0.000000e+00> : vector<256x128xf32>
    %7 = tpu.matmul %5, %6, %cst {dimension_numbers = #tpu.dot_dimension_numbers<[1], [0], [0], [1], [0, 0, 1, 1], [], []>} : vector<256x128xbf16>, vector<128x128xbf16>, vector<256x128xf32> -> vector<256x128xf32>
    %8 = arith.addf %3, %7 : vector<256x128xf32>
    %c0_6 = arith.constant 0 : index
    %c0_7 = arith.constant 0 : index
    %9 = vector.load %arg7[%c0_6, %c0_7] : memref<256x128xf32, #tpu.memory_space<vmem>>, vector<256x128xf32>
    tpu.vector_store %arg7[%c0_6, %c0_7], %8 {strides = array<i32>} : memref<256x128xf32, #tpu.memory_space<vmem>>, vector<256x128xf32>,
    %c0_i32_8 = arith.constant 0 : i32
    %10 = arith.cmpi eq, %arg2, %c0_i32_8 : i32
    %11 = arith.extui %10 : i1 to i32
    %c0_i32_9 = arith.constant 0 : i32
    %12 = arith.cmpi ne, %11, %c0_i32_9 : i32
    scf.if %12 {
      %c0_10 = arith.constant 0 : index
      %c0_11 = arith.constant 0 : index
      %13 = vector.load %arg7[%c0_10, %c0_11] : memref<256x128xf32, #tpu.memory_space<vmem>>, vector<256x128xf32>
      %c0_12 = arith.constant 0 : index
      %c0_13 = arith.constant 0 : index
      %14 = vector.load %arg5[%c0_12, %c0_13] : memref<1x128xf32, #tpu.memory_space<vmem>>, vector<1x128xf32>
      %15 = vector.broadcast %14 : vector<1x128xf32> to vector<256x128xf32>
      %16 = arith.addf %13, %15 : vector<256x128xf32>
      %17 = arith.truncf %16 : vector<256x128xf32> to vector<256x128xbf16>
      %c0_14 = arith.constant 0 : index
      %c0_15 = arith.constant 0 : index
      %18 = vector.load %arg6[%c0_14, %c0_15] : memref<256x128xbf16, #tpu.memory_space<vmem>>, vector<256x128xbf16>
      tpu.vector_store %arg6[%c0_14, %c0_15], %17 {strides = array<i32>} : memref<256x128xbf16, #tpu.memory_space<vmem>>, vector<256x128xbf16>,
    } else {
    }
    return
  }
  func.func @transform_0(%arg0: i32, %arg1: i32, %arg2: i32) -> (i32, i32) {
    %c0_i32 = arith.constant 0 : i32
    return %arg0, %arg2 : i32, i32
  }
  func.func @transform_1(%arg0: i32, %arg1: i32, %arg2: i32) -> (i32, i32) {
    %c0_i32 = arith.constant 0 : i32
    return %arg2, %arg1 : i32, i32
  }
  func.func @transform_2(%arg0: i32, %arg1: i32, %arg2: i32) -> (i32, i32) {
    %c0_i32 = arith.constant 0 : i32
    %c0_i32_0 = arith.constant 0 : i32
    return %c0_i32, %arg1 : i32, i32
  }
  func.func @transform_3(%arg0: i32, %arg1: i32, %arg2: i32) -> (i32, i32) {
    %c0_i32 = arith.constant 0 : i32
    return %arg0, %arg1 : i32, i32
  }
}

</mosaic_0001>

<bundles_post_ra>
// kernel: tpu_custom_call.1
= control target key start
LH: loop header
LB: loop body
LE: loop exit
PB: predicated region body
PF: predicated region fallthrough
CT: control target
= control target key end

     0   :  { %s2105_s0 = inlined_call_operand.hbm [shape: f32[512,128], index: 0, kind: input, shape index: {}]   ;;  %s2106_s1 = inlined_call_operand.hbm [shape: bf16[128,384], index: 1, kind: input, shape index: {}]   ;;  %s2107_s2 = inlined_call_operand.vmem [shape: f32[1,384], index: 2, kind: input, shape index: {}]   ;;  %s2108_s3 = inlined_call_operand.hbm [shape: bf16[512,384], index: 3, kind: output, shape index: {}]  }
   0x1   :  { %2116 = sst [smem:[#allocation18_spill]] %s2105_s0 }
   0x2   :  { %2117 = sst [smem:[#allocation19_spill]] %s2107_s2 }
   0x3   :  { %2118 = sst [smem:[#allocation20_spill]] %s2108_s3 }
   0x4   :  { %8 = vsyncpa [#allocation4], 0 }
   0x5   :  { %10 = vsyncpa [#allocation4 + $0x1], 0 }
   0x6   :  { %11 = vsyncpa [#allocation7], 0 }
   0x7   :  { %13 = vsyncpa [#allocation7 + $0x1], 0 }
   0x8   :  { %14 = vsyncpa [#allocation5], 0 }
   0x9   :  { %16 = vsyncpa [#allocation5 + $0x1], 0  ;;  %s1716_s12 = smov 0   ;;  %s1718_s13 = smov 0  }
   0xa   :  { %s1720_s14 = smov 0   ;;  %s1722_s15 = smov 0  }
   0xb   :  { %s1724_s16 = smov 0   ;;  %s1726_s17 = smov 0  }
   0xc   :  { %s1728_s18 = smov 0   ;;  %s1730_s19 = smov 0  }
   0xd   :  { %s1732_s20 = smov 0   ;;  %s1734_s21 = smov 0  }
   0xe   :  { %s1736_s22 = smov 0   ;;  %s1738_s23 = smov 0  }
   0xf   :  { %s1740_s24 = smov 0   ;;  %s1742_s25 = smov 0  }
  0x10 LB: > { %2119 = sst [smem:[#allocation12_spill]] %s1671_s22  ;;  %s1055_s26 = sadd.s32 4294967295, %s1683_s25   ;;  %s1683_s25 = sphi %s1742_s25, %s22_s25   ;;  %s1679_s24 = sphi %s1740_s24, %s2161_s24   ;;  %s1675_s23 = sphi %s1738_s23, %s2160_s23   ;;  %s1671_s22 = sphi %s1736_s22, %s2147_s22   ;;  %s1667_s21 = sphi %s1734_s21, %s2159_s21   ;;  %s1663_s20 = sphi %s1732_s20, %s2158_s20   ;;  %s1659_s19 = sphi %s1730_s19, %s2157_s19   ;;  %s1655_s18 = sphi %s1728_s18, %s2156_s18   ;;  %s1651_s17 = sphi %s1726_s17, %s2155_s17   ;;  %s1647_s16 = sphi %s1724_s16, %s2154_s16   ;;  %s1643_s15 = sphi %s1722_s15, %s2153_s15   ;;  %s1639_s14 = sphi %s1720_s14, %s2152_s14   ;;  %s1635_s13 = sphi %s1718_s13, %s2151_s13   ;;  %s1631_s12 = sphi %s1716_s12, %s2150_s12  }
  0x11   : > { %2120 = sst [smem:[#allocation13_spill]] %s1679_s24  ;;  %p57_p0 = scmp.ne.s32.totalorder %s1663_s20, %s1659_s19 }
  0x12   : > { %p58_p1 = scmp.eq.s32.totalorder %s1683_s25, 0  ;;  %p63_p2 = scmp.ne.s32.totalorder %s1659_s19, %s1655_s18 }
  0x13   : > { %p1791_p3 = scmp.eq.s32.totalorder %s1055_s26, 0  ;;  %p1795_p4 = scmp.eq.s32.totalorder %s1055_s26, 5 }
  0x14   : > { %p59_p5 = por %p58_p1, %p57_p0  ;;  %p1349_p7 = scmp.lt.s32.totalorder %s1683_s25, 6 }
  0x15   : > { %p1803_p6 = por %p1791_p3, %p63_p2  ;;  %s169_s5 = sand.u32 1, %s1663_s20  }
  0x16   : > { %s1115_s6 = sshll.u32 %s1679_s24, 12  ;;  %s1059_s7 = sshll.u32 %s169_s5, 8 }
  0x17   : > { %s2124_s0 = sld [smem:[#allocation18_spill]]  ;;  %s173_s11 = scalar_lea.vmem [#allocation3], %s1059_s7 }
  0x18   : > { %s181_s18 = sshll.u32 %s173_s11, 4  ;;  %p1815_p8 = pnand %p1349_p7, %p59_p5  ;;  %s182_s18 = int_to_ptr.vmem [resolvable:$true] %s181_s18 }
  0x19   : > { %s170_s28 = scalar_lea.sflag [#allocation4], %s169_s5  ;;  %s1492_s27 = scalar_lea.vmem %s182_s18, 4096 }
  0x1a   : > { %p1481_p9 = pneg %p1815_p8  ;;  %p1493_p10 = scmp.ne.s32.totalorder %s182_s18, %s1492_s27 }
  0x1b   : > { %s1685_s3 = smov [#allocation3]  }
  0x1c   : > { %p1495_p11 = pnand %p1493_p10, %p1481_p9  ;;  %s1497_s22 = sshll.u32 %s1685_s3, 4  ;;  %s1498_s22 = int_to_ptr.vmem [resolvable:$false] %s1497_s22 }
  0x1d   : > { %s180_s10 = scalar_lea.hbm %s2124_s0, %s1115_s6  ;;  %s1499_s6 = scalar_lea.vmem %s1498_s22, 8192 }
  0x1e   : > { %p1496_p12 = pneg %p1495_p11  ;;  %p1500_p13 = scmp.lt.s32.totalorder %s182_s18, %s1498_s22 }
  0x1f   : > { %p1501_p0 = scmp.lt.s32.totalorder %s1499_s6, %s1492_s27 }
  0x21   : > { %p1502_p2 = por %p1501_p0, %p1500_p13 }
  0x23   : > { %p1503_p5 = pnand %p1502_p2, %p1496_p12 }
  0x25   : > { %1506 = shalt.err (!%p1503_p5)
}
  0x26   : > { %s1686_s7 = smov 128   ;;  %s1687_s3 = smov 8  }
  0x27   : > { %1341 = dma.hbm_to_vmem [thread:$0]  (!%p1815_p8), %s180_s10, 4096, %s182_s18, %s170_s28, %s1686_s7, %s1686_s7, %s1687_s3  }
  0x28   : > { %p1064_p9 = scmp.ge.s32.totalorder %s1683_s25, 1  ;;  %p218_p10 = scmp.lt.s32.totalorder %s1683_s25, 7 }
  0x29   : > { %s1056_s27 = sadd.s32 4294967294, %s1683_s25   ;;  %s37_s5 = sadd.s32 1, %s1675_s23 }
  0x2a   : > { %p1825_p11 = pnand %p1064_p9, %p218_p10  ;;  %s78_s8 = sadd.s32 1, %s1651_s17 }
  0x2b   : > { %p39_p12 = scmp.ge.s32.totalorder %s37_s5, 3  ;;  %p85_p13 = scmp.ne.s32.totalorder %s1651_s17, %s1647_s16 }
  0x2c   : > { %p91_p0 = scmp.ne.s32.totalorder %s1647_s16, %s1643_s15  ;;  %s132_s9 = sadd.s32 1, %s1639_s14 }
  0x2d   : > { %s2163_s5 = smov (%p39_p12, %s37_s5), 0  ;;  %s2128_s28 = sadd.s32 1, %s1679_s24 }
  0x2e   : > { %2127 = sst [smem:[#allocation14_spill]] %s2163_s5  ;;  %s2165_s28 = smov (!%p39_p12, %s2128_s28), %s1679_s24 }
  0x2f   : > { %s74_s10 = ssub.s32 %s1675_s23, %s2163_s5  ;;  %p1846_p8 = por %p85_p13, %p58_p1 }
  0x30   : > { %p43_p2 = scmp.ge.s32.totalorder %s2165_s28, 2  ;;  %p76_p5 = scmp.eq.s32.totalorder %s74_s10, 0 }
  0x31   : > { %p1852_p9 = por %p91_p0, %p1791_p3  ;;  %p142_p10 = scmp.ne.s32.totalorder %s1639_s14, %s1635_s13 }
  0x32   : > { %s2167_s28 = smov (%p43_p2, %s2165_s28), 0  ;;  %p148_p13 = scmp.ne.s32.totalorder %s1635_s13, %s1631_s12 }
  0x33   : > { %2131 = sst [smem:[#allocation15_spill]] %s2167_s28  ;;  %s45_s26 = ssub.s32 %s1679_s24, %s2167_s28 }
  0x34   : > { %s1861_s18 = scalar_select %p76_p5, %s1651_s17, %s78_s8  }
  0x35   : > { %p1867_p1 = por %p1795_p4, %p142_p10  ;;  %p48_p12 = scmp.eq.s32.totalorder %s45_s26, 0 }
  0x36   : > { %2132 = sst [smem:[#allocation16_spill]] %s1861_s18  ;;  %s129_s29 = sor.u32 %s74_s10, %s45_s26 }
  0x37   : > { %s2133_s6 = scalar_select %p1867_p1, 1, 0 }
  0x38   : > { %p130_p3 = scmp.eq.s32.totalorder %s129_s29, 0  ;;  %s2135_s7 = sadd.s32 1, %s1663_s20 }
  0x39   : > { %2134 = sst [smem:[#allocation17_spill]] %s2133_s6  ;;  %p149_p0 = scmp.eq.s32.totalorder %s1056_s27, 5 }
  0x3a   : > { %s1876_s3 = scalar_select %p48_p12, %s1663_s20, %s2135_s7  }
  0x3b   : > { %s1879_s0 = scalar_select %p130_p3, %s1639_s14, %s132_s9  }
  0x3c   : > { %s191_s8 = sand.u32 1, %s1651_s17   ;;  %p1882_p2 = por %p149_p0, %p148_p13 }
  0x3d   : > { %s1062_s5 = sshll.u32 %s191_s8, 6  ;;  %s1063_s28 = sshll.u32 %s1675_s23, 6 }
  0x3e   : > { %s2136_s30 = scalar_select %p1882_p2, 1, 0 }
  0x3f   : > { %s195_s24 = scalar_lea.vmem [#allocation6], %s1062_s5  ;;  %s203_s10 = scalar_lea.hbm %s2106_s1, %s1063_s28 }
  0x40   : > { %s204_s18 = sshll.u32 %s195_s24, 4  ;;  %p1894_p4 = pnand %p1349_p7, %p1846_p8  ;;  %s205_s18 = int_to_ptr.vmem [resolvable:$true] %s204_s18 }
  0x41   : > { %s192_s27 = scalar_lea.sflag [#allocation7], %s191_s8  ;;  %s1520_s26 = scalar_lea.vmem %s205_s18, 1024 }
  0x42   : > { %p1509_p5 = pneg %p1894_p4  ;;  %p1521_p10 = scmp.ne.s32.totalorder %s205_s18, %s1520_s26 }
  0x43   : > { %s1688_s24 = smov [#allocation6]  }
  0x44   : > { %p1523_p12 = pnand %p1521_p10, %p1509_p5  ;;  %s1525_s5 = sshll.u32 %s1688_s24, 4  ;;  %s1526_s5 = int_to_ptr.vmem [resolvable:$false] %s1525_s5 }
  0x45   : > { %s1527_s2 = scalar_lea.vmem %s1526_s5, 2048  ;;  %p1528_p13 = scmp.lt.s32.totalorder %s205_s18, %s1526_s5 }
  0x46   : > { %p1524_p3 = pneg %p1523_p12  ;;  %p1529_p0 = scmp.lt.s32.totalorder %s1527_s2, %s1520_s26 }
  0x48   : > { %p1530_p2 = por %p1529_p0, %p1528_p13 }
  0x4a   : > { %p1531_p1 = pnand %p1530_p2, %p1524_p3 }
  0x4c   : > { %1534 = shalt.err (!%p1531_p1)
}
  0x4d   : > { %s1689_s28 = smov 192   ;;  %s1690_s11 = smov 64  }
  0x4e   : > { %s1691_s6 = smov 4   ;;  %222 = sbr.rel (%p1825_p11) target bundleno = 363 (0x16b), region = 32 }
  0x4f   : > { %1344 = dma.hbm_to_vmem [thread:$0]  (!%p1894_p4), %s203_s10, 1024, %s205_s18, %s192_s27, %s1689_s28, %s1690_s11, %s1691_s6  }
  0x50   : > { %s224_s29 = sand.u32 (!%p1825_p11), 1, %s1659_s19  }
  0x51   : > { %s1065_s7 = sshll.u32 (!%p1825_p11), %s224_s29, 8  ;;  %s225_s8 = scalar_lea.sflag (!%p1825_p11), [#allocation4], %s224_s29 }
  0x52   : > { %s1905_s24 = scalar_lea.vmem (!%p1825_p11), [#allocation3], %s1065_s7 }
  0x53   : > { %1618 = dma.done.wait (%p1803_p6), %s225_s8, 4096  }
  0x54   : > { %1620 = vsyncadd (%p1803_p6), %s225_s8, 4294963200  ;;  %s233_s26 = sand.u32 1, %s1647_s16  }
  0x55   : > { %s1066_s9 = sshll.u32 %s233_s26, 6  ;;  %s234_s18 = scalar_lea.sflag [#allocation7], %s233_s26 }
  0x56   : > { %s1912_s10 = scalar_lea.vmem [#allocation6], %s1066_s9 }
  0x57   : > { %1622 = dma.done.wait (%p1852_p9), %s234_s18, 1024  }
  0x58   : > { %1624 = vsyncadd (%p1852_p9), %s234_s18, 4294966272  ;;  %v1471_v0 = vld [vmem:[%s1912_s10 + $0x38] sm:$0xff]   ;;  %v1472_v1 = vld [vmem:[%s1912_s10 + $0x30] sm:$0xff]   ;;  %p270_p6 = scmp.lt.s32.totalorder %s1667_s21, 2  ;;  %s2138_s27 = sld [smem:[#allocation19_spill]] }
  0x59   : > { %1267 = vmatprep.subr.bf16.mxu0 %v1471_v0  ;;  %1315 = vmatprep.subr.bf16.mxu1 %v1471_v0  ;;  %v1473_v2 = vld [vmem:[%s1912_s10 + $0x28] sm:$0xff]   ;;  %v1474_v3 = vld [vmem:[%s1912_s10 + $0x20] sm:$0xff]   ;;  %v1475_v10 = vld [vmem:[%s1912_s10 + $0x18] sm:$0xff]   ;;  %s265_s2 = sand.u32 1, %s1635_s13   ;;  %s2139_s6 = sld [smem:[#allocation12_spill]] }
  0x5a   : > { %1268 = vmatpush3.bf16.msra.mxu0 %v1471_v0  ;;  %1323 = vmatpush3.bf16.msra.mxu1 %v1471_v0  ;;  %v343_v4 = vld [vmem:[%s1905_s24] sm:$0xff]  ;;  %v344_v5 = vld [vmem:[%s1905_s24 + $0x8] sm:$0xff]  ;;  %v1476_v11 = vld [vmem:[%s1912_s10 + $0x10] sm:$0xff]   ;;  %s271_s4 = scalar_select %p270_p6, %s1667_s21, 2 }
  0x5b   : > { %1269 = vmatprep.subr.bf16.mxu0 %v1472_v1  ;;  %1316 = vmatprep.subr.bf16.mxu1 %v1472_v1  ;;  %v359_v6 = vld [vmem:[%s1905_s24 + $0x80] sm:$0xff]  ;;  %v375_v7 = vpack.c.bf16 %v344_v5, %v343_v4  ;;  %v360_v8 = vld [vmem:[%s1905_s24 + $0x88] sm:$0xff]  ;;  %v345_v14 = vld [vmem:[%s1905_s24 + $0x10] sm:$0xff]  ;;  %s1067_s28 = sshll.u32 %s265_s2, 7  ;;  %s2141_s18 = sld [smem:[#allocation20_spill]] }
  0x5c   : > { %v383_v9 = vpack.c.bf16 %v360_v8, %v359_v6  ;;  %v1477_v12 = vld [vmem:[%s1912_s10 + $0x8] sm:$0xff]   ;;  %v1478_v13 = vld [vmem:[%s1912_s10] sm:$0xff]   ;;  %v346_v15 = vld [vmem:[%s1905_s24 + $0x18] sm:$0xff]  ;;  %s1976_s11 = scalar_lea.vmem [#allocation8], %s1067_s28  ;;  %s2030_s22 = scalar_lea.sflag [#allocation5], %s265_s2 }
  0x5d   : > { %1283 = vmatprep.mubr.bf16.mxu0 %v375_v7  ;;  %v361_v16 = vld [vmem:[%s1905_s24 + $0x90] sm:$0xff]  ;;  %v362_v17 = vld [vmem:[%s1905_s24 + $0x98] sm:$0xff]  ;;  %v347_v18 = vld [vmem:[%s1905_s24 + $0x20] sm:$0xff]  ;;  %v376_v22 = vpack.c.bf16 %v346_v15, %v345_v14 }
  0x5e   : > { %1270 = vmatpush3.bf16.msra.mxu0 %v1472_v1  ;;  %1324 = vmatpush3.bf16.msra.mxu1 %v1472_v1  ;;  %v348_v19 = vld [vmem:[%s1905_s24 + $0x28] sm:$0xff]  ;;  %v363_v20 = vld [vmem:[%s1905_s24 + $0xa0] sm:$0xff]  ;;  %v384_v23 = vpack.c.bf16 %v362_v17, %v361_v16  ;;  %v349_v26 = vld [vmem:[%s1905_s24 + $0x30] sm:$0xff]  ;;  %s272_s5 = scalar_lea.vmem %s2138_s27, %s271_s4  ;;  %s1692_s27 = smov [#allocation8]  }
  0x5f   : > { %1271 = vmatprep.subr.bf16.mxu0 %v1473_v2  ;;  %1317 = vmatprep.subr.bf16.mxu1 %v1473_v2  ;;  %v364_v21 = vld [vmem:[%s1905_s24 + $0xa8] sm:$0xff]  ;;  %v377_v24 = vpack.c.bf16 %v348_v19, %v347_v18  ;;  %v350_v27 = vld [vmem:[%s1905_s24 + $0x38] sm:$0xff]  ;;  %v365_v28 = vld [vmem:[%s1905_s24 + $0xb0] sm:$0xff]  ;;  %s1331_s29 = smul.u32 96, %s2139_s6 }
  0x60   : > { %1299 = vmatprep.mubr.bf16.mxu1 %v383_v9  ;;  %v385_v25 = vpack.c.bf16 %v364_v21, %v363_v20  ;;  %v366_v29 = vld [vmem:[%s1905_s24 + $0xb8] sm:$0xff]  ;;  %v351_v30 = vld [vmem:[%s1905_s24 + $0x40] sm:$0xff]  ;;  %v352_v31 = vld [vmem:[%s1905_s24 + $0x48] sm:$0xff]  ;;  %v378_v34 = vpack.c.bf16 %v350_v27, %v349_v26 }
  0x61   : > { %v367_v32 = vld [vmem:[%s1905_s24 + $0xc0] sm:$0xff]  ;;  %v368_v33 = vld [vmem:[%s1905_s24 + $0xc8] sm:$0xff]  ;;  %v386_v35 = vpack.c.bf16 %v366_v29, %v365_v28  ;;  %v379_v36 = vpack.c.bf16 %v352_v31, %v351_v30  ;;  %v353_v38 = vld [vmem:[%s1905_s24 + $0x50] sm:$0xff]  ;;  %s927_s7 = sadd.s32 %s1667_s21, %s1331_s29  ;;  %s2140_s21 = sld [smem:[#allocation17_spill]] }
  0x62   : > { %1272 = vmatpush3.bf16.msra.mxu0 %v1473_v2  ;;  %1325 = vmatpush3.bf16.msra.mxu1 %v1473_v2  ;;  %v387_v37 = vpack.c.bf16 %v368_v33, %v367_v32  ;;  %v354_v39 = vld [vmem:[%s1905_s24 + $0x58] sm:$0xff]  ;;  %v369_v40 = vld [vmem:[%s1905_s24 + $0xd0] sm:$0xff]  ;;  %v355_v42 = vld [vmem:[%s1905_s24 + $0x60] sm:$0xff]  ;;  %s1112_s8 = sshll.u32 %s927_s7, 6  ;;  %s2142_s10 = smov %s2141_s18 }
  0x63   : > { %1273 = vmatprep.subr.bf16.mxu0 %v1474_v3  ;;  %1318 = vmatprep.subr.bf16.mxu1 %v1474_v3  ;;  %v370_v41 = vld [vmem:[%s1905_s24 + $0xd8] sm:$0xff]  ;;  %v356_v43 = vld [vmem:[%s1905_s24 + $0x68] sm:$0xff]  ;;  %v371_v44 = vld [vmem:[%s1905_s24 + $0xe0] sm:$0xff]  ;;  %v380_v46 = vpack.c.bf16 %v354_v39, %v353_v38  ;;  %s2020_s4 = scalar_lea.hbm %s2141_s18, %s1112_s8 }
  0x64   : > { %v372_v45 = vld [vmem:[%s1905_s24 + $0xe8] sm:$0xff]  ;;  %v388_v47 = vpack.c.bf16 %v370_v41, %v369_v40  ;;  %v381_v48 = vpack.c.bf16 %v356_v43, %v355_v42  ;;  %v357_v50 = vld [vmem:[%s1905_s24 + $0x70] sm:$0xff]  ;;  %v358_v51 = vld [vmem:[%s1905_s24 + $0x78] sm:$0xff] }
  0x65   : > { %v389_v49 = vpack.c.bf16 %v372_v45, %v371_v44  ;;  %v373_v52 = vld [vmem:[%s1905_s24 + $0xf0] sm:$0xff]  ;;  %v374_v53 = vld [vmem:[%s1905_s24 + $0xf8] sm:$0xff]  ;;  %v382_v54 = vpack.c.bf16 %v358_v51, %v357_v50  ;;  %v1964_v58 = vld [vmem:[%s272_s5] ss:$0 sm:$0xff]  ;;  %s930_s24 = sshll.u32 %s1976_s11, 4  ;;  %s1539_s5 = sshll.u32 %s1692_s27, 4  ;;  %s2022_s24 = int_to_ptr.vmem [resolvable:$true] %s930_s24  ;;  %s1540_s5 = int_to_ptr.vmem [resolvable:$false] %s1539_s5 }
  0x66   : > { %1274 = vmatpush3.bf16.msra.mxu0 %v1474_v3  ;;  %1326 = vmatpush3.bf16.msra.mxu1 %v1474_v3  ;;  %v390_v55 = vpack.c.bf16 %v374_v53, %v373_v52  ;;  %s1535_s15 = scalar_lea.vmem %s2022_s24, 2048  ;;  %s1541_s28 = scalar_lea.vmem %s1540_s5, 4096 }
  0x67   : > { %1275 = vmatprep.subr.bf16.mxu0 %v1475_v10  ;;  %1319 = vmatprep.subr.bf16.mxu1 %v1475_v10  ;;  %p1536_p7 = scmp.ne.s32.totalorder %s2022_s24, %s1535_s15  ;;  %p2143_p11 = scmp.ne.s32.totalorder %s2140_s21, 0 }
  0x68   : > { %p1542_p1 = scmp.lt.s32.totalorder %s2022_s24, %s1540_s5  ;;  %p1543_p2 = scmp.lt.s32.totalorder %s1541_s28, %s1535_s15 }
  0x69   : > { %p1537_p8 = pnand %p1536_p7, %p2143_p11 }
  0x6a   : > { %1276 = vmatpush3.bf16.msra.mxu0 %v1475_v10  ;;  %1327 = vmatpush3.bf16.msra.mxu1 %v1475_v10  ;;  %p1544_p4 = por %p1543_p2, %p1542_p1 }
  0x6b   : > { %1277 = vmatprep.subr.bf16.mxu0 %v1476_v11  ;;  %1320 = vmatprep.subr.bf16.mxu1 %v1476_v11  ;;  %p1538_p9 = pneg %p1537_p8 }
  0x6d   : > { %p1545_p5 = pnand %p1544_p4, %p1538_p9 }
  0x6e   : > { %1278 = vmatpush3.bf16.msra.mxu0 %v1476_v11  ;;  %1328 = vmatpush3.bf16.msra.mxu1 %v1476_v11 }
  0x6f   : > { %1279 = vmatprep.subr.bf16.mxu0 %v1477_v12  ;;  %1321 = vmatprep.subr.bf16.mxu1 %v1477_v12 }
  0x72   : > { %1280 = vmatpush3.bf16.msra.mxu0 %v1477_v12  ;;  %1329 = vmatpush3.bf16.msra.mxu1 %v1477_v12 }
  0x73   : > { %1281 = vmatprep.subr.bf16.mxu0 %v1478_v13  ;;  %1322 = vmatprep.subr.bf16.mxu1 %v1478_v13 }
  0x76   : > { %1282 = vmatpush3.bf16.msra.mxu0 %v1478_v13  ;;  %1330 = vmatpush3.bf16.msra.mxu1 %v1478_v13 }
  0x79   : > { %1284 = vmatmul.mubr.bf16.vlgmr.msra.gmra.mxu0 %v376_v22  ;;  %1300 = vmatmul.mubr.bf16.vlgmr.msra.gmra.mxu1 %v384_v23 }
  0x7a   : > { %1287 = vmatprep.mubr.bf16.mxu0 %v377_v24  ;;  %1303 = vmatprep.mubr.bf16.mxu1 %v385_v25 }
  0x81   : > { %1288 = vmatmul.mubr.bf16.gmra.mxu0 %v378_v34  ;;  %1304 = vmatmul.mubr.bf16.gmra.mxu1 %v386_v35 }
  0x82   : > { %1291 = vmatprep.mubr.bf16.mxu0 %v379_v36  ;;  %1307 = vmatprep.mubr.bf16.mxu1 %v387_v37 }
  0x89   : > { %1292 = vmatmul.mubr.bf16.gmra.mxu0 %v380_v46  ;;  %1308 = vmatmul.mubr.bf16.gmra.mxu1 %v388_v47 }
  0x8a   : > { %1295 = vmatprep.mubr.bf16.mxu0 %v381_v48  ;;  %1311 = vmatprep.mubr.bf16.mxu1 %v389_v49 }
  0x91   : > { %1296 = vmatmul.mubr.bf16.gmra.mxu0 %v382_v54  ;;  %1312 = vmatmul.mubr.bf16.gmra.mxu1 %v390_v55 }
 0x139   : > { %v1285_v56 = vpop.f32.mrf.mxu0  ;;  %v1301_v57 = vpop.f32.mrf.mxu1 }
 0x13a   : > { %v724_v63 = vadd.f32 %v1285_v56, %v1964_v58  ;;  %v740_v0 = vadd.f32 %v1301_v57, %v1964_v58 }
 0x13b   : > { %v489_v59 = vpop.f32.mrf.mxu0  ;;  %v553_v60 = vpop.f32.mrf.mxu1 }
 0x13c   : > { %v722_v3 = vadd.f32 %v1964_v58, %v489_v59  ;;  %v738_v4 = vadd.f32 %v1964_v58, %v553_v60 }
 0x13d   : > { %v1286_v61 = vpop.f32.mrf.mxu0  ;;  %v1302_v62 = vpop.f32.mrf.mxu1 }
 0x13e   : > { %v725_v1 = vadd.f32 %v1286_v61, %v1964_v58  ;;  %v741_v2 = vadd.f32 %v1302_v62, %v1964_v58 }
 0x13f   : > { %v492_v5 = vpop.f32.mrf.mxu0  ;;  %v556_v6 = vpop.f32.mrf.mxu1 }
 0x140   : > { %v1156_v7 = vpack.c.bf16 %v725_v1, %v724_v63  ;;  %v1196_v8 = vpack.c.bf16 %v741_v2, %v740_v0  ;;  %v723_v9 = vadd.f32 %v1964_v58, %v492_v5  ;;  %v739_v10 = vadd.f32 %v1964_v58, %v556_v6 }
 0x141   : > { %v1289_v11 = vpop.f32.mrf.mxu0  ;;  %v1305_v12 = vpop.f32.mrf.mxu1 }
 0x142   : > { %1228 = vst [vmem:[%s1976_s11 + $0x8] sm:$0xff] %v1156_v7   ;;  %1236 = vst [vmem:[%s1976_s11 + $0x48] sm:$0xff] %v1196_v8   ;;  %v1151_v13 = vpack.c.bf16 %v723_v9, %v722_v3  ;;  %v1191_v14 = vpack.c.bf16 %v739_v10, %v738_v4  ;;  %v728_v19 = vadd.f32 %v1289_v11, %v1964_v58 }
 0x143   : > { %v505_v15 = vpop.f32.mrf.mxu0  ;;  %v569_v16 = vpop.f32.mrf.mxu1  ;;  %v744_v20 = vadd.f32 %v1305_v12, %v1964_v58 }
 0x144   : > { %1152 = vst [vmem:[%s1976_s11] sm:$0xff] %v1151_v13   ;;  %1235 = vst [vmem:[%s1976_s11 + $0x40] sm:$0xff] %v1191_v14   ;;  %v726_v23 = vadd.f32 %v1964_v58, %v505_v15  ;;  %v742_v24 = vadd.f32 %v1964_v58, %v569_v16 }
 0x145   : > { %v1290_v17 = vpop.f32.mrf.mxu0  ;;  %v1306_v18 = vpop.f32.mrf.mxu1 }
 0x146   : > { %v729_v21 = vadd.f32 %v1290_v17, %v1964_v58  ;;  %v745_v22 = vadd.f32 %v1306_v18, %v1964_v58 }
 0x147   : > { %v508_v25 = vpop.f32.mrf.mxu0  ;;  %v572_v26 = vpop.f32.mrf.mxu1 }
 0x148   : > { %v1166_v27 = vpack.c.bf16 %v729_v21, %v728_v19  ;;  %v1206_v28 = vpack.c.bf16 %v745_v22, %v744_v20  ;;  %v727_v29 = vadd.f32 %v1964_v58, %v508_v25  ;;  %v743_v30 = vadd.f32 %v1964_v58, %v572_v26 }
 0x149   : > { %v1293_v31 = vpop.f32.mrf.mxu0  ;;  %v1309_v32 = vpop.f32.mrf.mxu1 }
 0x14a   : > { %1230 = vst [vmem:[%s1976_s11 + $0x18] sm:$0xff] %v1166_v27   ;;  %1238 = vst [vmem:[%s1976_s11 + $0x58] sm:$0xff] %v1206_v28   ;;  %v1161_v33 = vpack.c.bf16 %v727_v29, %v726_v23  ;;  %v1201_v34 = vpack.c.bf16 %v743_v30, %v742_v24  ;;  %v732_v39 = vadd.f32 %v1293_v31, %v1964_v58 }
 0x14b   : > { %v521_v35 = vpop.f32.mrf.mxu0  ;;  %v585_v36 = vpop.f32.mrf.mxu1  ;;  %v748_v40 = vadd.f32 %v1309_v32, %v1964_v58 }
 0x14c   : > { %1229 = vst [vmem:[%s1976_s11 + $0x10] sm:$0xff] %v1161_v33   ;;  %1237 = vst [vmem:[%s1976_s11 + $0x50] sm:$0xff] %v1201_v34   ;;  %v730_v43 = vadd.f32 %v1964_v58, %v521_v35  ;;  %v746_v44 = vadd.f32 %v1964_v58, %v585_v36 }
 0x14d   : > { %v1294_v37 = vpop.f32.mrf.mxu0  ;;  %v1310_v38 = vpop.f32.mrf.mxu1 }
 0x14e   : > { %v733_v41 = vadd.f32 %v1294_v37, %v1964_v58  ;;  %v749_v42 = vadd.f32 %v1310_v38, %v1964_v58 }
 0x14f   : > { %v524_v45 = vpop.f32.mrf.mxu0  ;;  %v588_v46 = vpop.f32.mrf.mxu1 }
 0x150   : > { %v1176_v47 = vpack.c.bf16 %v733_v41, %v732_v39  ;;  %v1216_v48 = vpack.c.bf16 %v749_v42, %v748_v40  ;;  %v731_v49 = vadd.f32 %v1964_v58, %v524_v45  ;;  %v747_v50 = vadd.f32 %v1964_v58, %v588_v46 }
 0x151   : > { %v1297_v51 = vpop.f32.mrf.mxu0  ;;  %v1313_v52 = vpop.f32.mrf.mxu1 }
 0x152   : > { %1232 = vst [vmem:[%s1976_s11 + $0x28] sm:$0xff] %v1176_v47   ;;  %1240 = vst [vmem:[%s1976_s11 + $0x68] sm:$0xff] %v1216_v48   ;;  %v1171_v53 = vpack.c.bf16 %v731_v49, %v730_v43  ;;  %v1211_v54 = vpack.c.bf16 %v747_v50, %v746_v44  ;;  %v736_v60 = vadd.f32 %v1297_v51, %v1964_v58 }
 0x153   : > { %v537_v55 = vpop.f32.mrf.mxu0  ;;  %v601_v56 = vpop.f32.mrf.mxu1  ;;  %v752_v61 = vadd.f32 %v1313_v52, %v1964_v58 }
 0x154   : > { %1231 = vst [vmem:[%s1976_s11 + $0x20] sm:$0xff] %v1171_v53   ;;  %1239 = vst [vmem:[%s1976_s11 + $0x60] sm:$0xff] %v1211_v54   ;;  %v734_v0 = vadd.f32 %v1964_v58, %v537_v55  ;;  %v750_v1 = vadd.f32 %v1964_v58, %v601_v56 }
 0x155   : > { %v1298_v57 = vpop.f32.mrf.mxu0  ;;  %v1314_v59 = vpop.f32.mrf.mxu1 }
 0x156   : > { %v737_v62 = vadd.f32 %v1298_v57, %v1964_v58  ;;  %v753_v63 = vadd.f32 %v1314_v59, %v1964_v58 }
 0x157   : > { %v540_v2 = vpop.f32.mrf.mxu0  ;;  %v604_v3 = vpop.f32.mrf.mxu1 }
 0x158   : > { %v1186_v4 = vpack.c.bf16 %v737_v62, %v736_v60  ;;  %v1226_v5 = vpack.c.bf16 %v753_v63, %v752_v61  ;;  %v735_v6 = vadd.f32 %v1964_v58, %v540_v2  ;;  %v751_v7 = vadd.f32 %v1964_v58, %v604_v3 }
 0x15a   : > { %1234 = vst [vmem:[%s1976_s11 + $0x38] sm:$0xff] %v1186_v4   ;;  %1242 = vst [vmem:[%s1976_s11 + $0x78] sm:$0xff] %v1226_v5   ;;  %v1181_v8 = vpack.c.bf16 %v735_v6, %v734_v0  ;;  %v1221_v9 = vpack.c.bf16 %v751_v7, %v750_v1 }
 0x15c   : > { %1233 = vst [vmem:[%s1976_s11 + $0x30] sm:$0xff] %v1181_v8   ;;  %1241 = vst [vmem:[%s1976_s11 + $0x70] sm:$0xff] %v1221_v9  }
 0x15d   : > { %1548 = shalt.err (!%p1545_p5)
}
 0x15e   : > { %s1549_s2 = scalar_lea.hbm %s2020_s4, 2048  ;;  %s1553_s29 = scalar_lea.hbm %s2142_s10, 12288 }
 0x15f   : > { %p1550_p10 = scmp.ne.s32.totalorder %s2020_s4, %s1549_s2  ;;  %p1554_p13 = scmp.lt.s32.totalorder %s2020_s4, %s2142_s10 }
 0x160   : > { %p1555_p0 = scmp.lt.s32.totalorder %s1553_s29, %s1549_s2 }
 0x161   : > { %p1551_p12 = pnand %p1550_p10, %p2143_p11 }
 0x162   : > { %p1556_p6 = por %p1555_p0, %p1554_p13 }
 0x163   : > { %p1552_p3 = pneg %p1551_p12 }
 0x165   : > { %p1557_p7 = pnand %p1556_p6, %p1552_p3 }
 0x167   : > { %1560 = shalt.err (!%p1557_p7)
}
 0x168   : > { %s1693_s26 = smov 64   ;;  %s1694_s9 = smov 192  }
 0x169   : > { %s1695_s18 = smov 4  }
 0x16a   : > { %1336 = dma.vmem_to_hbm [thread:$0]  (%p2143_p11), %s2022_s24, 2048, %s2020_s4, %s2030_s22, %s1693_s26, %s1694_s9, %s1695_s18  }
 0x16b PF: > { %p1350_p8 = scmp.ge.s32.totalorder %s1683_s25, 2  ;;  %s945_s15 = sand.u32 1, %s1631_s12  }
 0x16c   : > { %p2144_p9 = scmp.ne.s32.totalorder %s2136_s30, 0  ;;  %s946_s27 = scalar_lea.sflag [#allocation5], %s945_s15 }
 0x16e   : > { %p1346_p1 = pnand %p1350_p8, %p2144_p9 }
 0x170   : > { %p1347_p2 = pneg %p1346_p1 }
 0x172   : > { %1626 = dma.done.wait (%p1347_p2), %s946_s27, 2048  }
 0x173   : > { %1628 = vsyncadd (%p1347_p2), %s946_s27, 4294965248  ;;  %s22_s25 = sadd.s32 1, %s1683_s25   ;;  %s2146_s24 = sld [smem:[#allocation16_spill]] }
 0x174   : > { %p2058_p4 = scmp.ge.s32.totalorder %s22_s25, 8   ;;  %s2147_s22 = sld [smem:[#allocation13_spill]] }
 0x175   : > { %s2148_s30 = sld [smem:[#allocation14_spill]]  ;;  %s2150_s12 = smov %s1635_s13 }
 0x176   : > { %s2149_s4 = sld [smem:[#allocation15_spill]]  ;;  %s2151_s13 = smov %s1639_s14 }
 0x177   : > { %s2152_s14 = smov %s1879_s0  ;;  %s2153_s15 = smov %s1647_s16 }
 0x178   : > { %s2154_s16 = smov %s1651_s17  ;;  %s2156_s18 = smov %s1659_s19 }
 0x179   : > { %s2155_s17 = smov %s2146_s24  ;;  %s2157_s19 = smov %s1663_s20 }
 0x17a   : > { %s2158_s20 = smov %s1876_s3  ;;  %s2159_s21 = smov %s1675_s23 }
 0x17b   : > { %s2160_s23 = smov %s2148_s30  ;;  %21 = sbr.rel (!%p2058_p4) target bundleno = 16 (0x10), region = 101 }
 0x17c   : > { %s2161_s24 = smov %s2149_s4 }
 0x180   :  { %951 = vsyncpa [#allocation4], 1 }
 0x181   :  { %953 = vsyncpa [#allocation4 + $0x1], 1 }
 0x182   :  { %954 = vsyncpa [#allocation7], 1 }
 0x183   :  { %956 = vsyncpa [#allocation7 + $0x1], 1 }
 0x184   :  { %957 = vsyncpa [#allocation5], 1 }
 0x185   :  { %959 = vsyncpa [#allocation5 + $0x1], 1 }

</bundles_post_ra>
